<compile_context>
chip_gen: v6e
topology: v6e:2x2x1
jax: 0.10.0
libtpu: 0.0.40
codegen_flags: <defaults>
</compile_context>

<pallas_src>
import math

import jax
import jax.numpy as jnp
import numpy as np
from jax import lax
from jax.experimental import pallas as pl
from jax.experimental.pallas import tpu as pltpu


def _round_up(x: int, m: int) -> int:
    return ((x + m - 1) // m) * m


def _sublane_tile(itemsize: int) -> int:
    # native second-minor tile: 8 rows of 32-bit, packed for narrower dtypes
    return 8 * max(1, 4 // int(itemsize))


def _vmem_budget_bytes() -> int:
    """Generation-aware VMEM budget (also passed as vmem_limit_bytes)."""
    try:
        cap = int(pltpu.get_tpu_info().vmem_capacity_bytes)
    except Exception:
        cap = 64 * 1024 * 1024          # conservative fallback (v7x physical)
    return max(16 * 1024 * 1024, int(cap * 0.6))


# ----------------------------------------------------------------------------
# Conv kernel: 3x3 / stride-2 conv without any HBM im2col.
#
# The wrapper packs the zero-padded NHWC input with a *free* reshape so that
#     xq[n, i, p*Wq + j, q*Cin + c] = x_pad[n, 2*i + p, 2*j + q, c]
# Output pixel (r, j), tap (kh, kw) reads input (2r+kh, 2j+kw); with
# kh -> (a, p) and kw -> (b, q) this is xq[n, r+a, p*Wq + j + b, q*Cin + c],
# i.e. a contiguous slice per (kh, b) tap group, contracted over 2*Cin.
# ----------------------------------------------------------------------------
def _conv_tap_kernel(xm_ref, xh_ref, w_ref, b_ref, o_ref):
    """One tile: TH output rows x full output width x TN output channels.

    xm_ref: (1, TH, 2*Wq, 2*Cin)   packed rows [r0, r0+TH)
    xh_ref: (1, 1,  2*Wq, 2*Cin)   packed row  r0+TH (halo for the kh=2 taps)
    w_ref : (6, 2*Cin, TN)         folded weights, tap t = 2*kh + b
    b_ref : (1, TN)                f32 bias
    o_ref : (1, TH*Wo, TN)         flattened (row, col) output pixels
    """
    _, th, tw, c2 = xm_ref.shape
    wq = tw // 2
    wo = wq - 1                                   # kernel-side output width
    tn = o_ref.shape[-1]

    bias = b_ref[0].astype(jnp.float32)           # (TN,)
    halo = xh_ref[0, 0]                           # (2*Wq, 2*Cin)
    w_taps = [w_ref[t] for t in range(6)]         # hoisted constant loads

    def row_body(i, carry):
        row_u = xm_ref[0, i]                                        # kh = 0, 1
        nxt = jnp.minimum(i + 1, th - 1)
        row_d = jnp.where(i + 1 < th, xm_ref[0, nxt], halo)         # kh = 2
        acc = jnp.zeros((wo, tn), dtype=jnp.float32)
        for kh in range(3):
            src = row_u if kh < 2 else row_d
            col0 = (kh & 1) * wq
            for b in range(2):
                slab = src[col0 + b:col0 + b + wo, :]               # (Wo, 2*Cin)
                acc = acc + jnp.dot(slab, w_taps[2 * kh + b],
                                    preferred_element_type=jnp.float32)
        start = pl.multiple_of(i * wo, 8)
        o_ref[0, pl.ds(start, wo), :] = (acc + bias).astype(o_ref.dtype)
        return carry

    lax.fori_loop(0, th, row_body, 0)


def _plan_conv_tiles(ho, wo_k, tw, c2, coutp, itemsize, budget):
    """Pick (row tile TH, cout tile TN) to fit the VMEM budget."""
    tn = 256 if coutp % 256 == 0 else 128

    def footprint(th):
        x_blk = th * tw * c2 * itemsize
        halo = tw * c2 * itemsize
        w_blk = 6 * c2 * tn * itemsize
        o_blk = th * wo_k * tn * itemsize
        scratch = 4 * wo_k * tn * 4 + 6 * tw * c2 * 4      # per-row temporaries
        return 2 * (x_blk + halo + w_blk + tn * 4 + o_blk) + scratch

    th = max(2, min(ho, 512))
    while th > 2 and footprint(th) > budget:
        th = max(2, th // 2)
    return th, tn


def conv_downsample_2d(x_nchw, weight_oihw, bias, padding=1):
    n, cin, h, w = x_nchw.shape
    cout = weight_oihw.shape[0]
    dtype = x_nchw.dtype
    itemsize = int(jnp.dtype(dtype).itemsize)

    hp, wp = h + 2 * padding, w + 2 * padding
    ho = (hp - 3) // 2 + 1
    wo = (wp - 3) // 2 + 1

    sub = _sublane_tile(itemsize)
    wo_k = _round_up(wo, sub)          # kernel output width (sublane aligned)
    wq = wo_k + 1                      # packed columns incl. the +1 column halo
    tw = 2 * wq
    c2 = 2 * cin
    coutp = _round_up(cout, 128)       # lane-dense output channel dim

    budget = _vmem_budget_bytes()
    th, tn = _plan_conv_tiles(ho, wo_k, tw, c2, coutp, itemsize, budget)
    ho_pad = _round_up(ho, th)
    hq = ho_pad + 1                    # +1 packed-row halo for the kh=2 taps

    # ---- layout glue (XLA): transpose, one fused zero-pad, free reshape ----
    x = jnp.transpose(x_nchw, (0, 2, 3, 1))                       # NCHW -> NHWC
    xp = jnp.pad(x, ((0, 0),
                     (padding, 2 * hq - h - padding),
                     (padding, 2 * wq - w - padding),
                     (0, 0)))
    xq = xp.reshape(n, hq, tw, c2)     # free: packs row pairs / column pairs

    # weight (Cout, Cin, 3, 3) -> (6, 2*Cin, CoutP); tap t = 2*kh + b covers
    # kw in {2b, 2b+1} (kw=3 padded with zeros).  Cast to the activation dtype
    # so the MXU runs natively (intentional numerics change for bf16 inputs).
    wk = jnp.transpose(weight_oihw, (2, 3, 1, 0))                 # (3,3,Cin,Cout)
    wk = jnp.pad(wk, ((0, 0), (0, 1), (0, 0), (0, coutp - cout)))
    w6 = wk.reshape(3, 2, 2, cin, coutp).reshape(6, c2, coutp).astype(dtype)
    b2 = jnp.pad(bias.astype(jnp.float32), (0, coutp - cout)).reshape(1, coutp)

    grid = (n, ho_pad // th, coutp // tn)
    out = pl.pallas_call(
        _conv_tap_kernel,
        out_shape=jax.ShapeDtypeStruct((n, ho_pad * wo_k, coutp), dtype),
        grid=grid,
        in_specs=[
            pl.BlockSpec((1, th, tw, c2), lambda b, r, c: (b, r, 0, 0)),
            pl.BlockSpec((1, 1, tw, c2), lambda b, r, c: (b, (r + 1) * th, 0, 0)),
            pl.BlockSpec((6, c2, tn), lambda b, r, c: (0, 0, c)),
            pl.BlockSpec((1, tn), lambda b, r, c: (0, c)),
        ],
        out_specs=pl.BlockSpec((1, th * wo_k, tn), lambda b, r, c: (b, r, c)),
        compiler_params=pltpu.CompilerParams(
            dimension_semantics=("parallel", "parallel", "parallel"),
            vmem_limit_bytes=budget),
    )(xq, xq, w6, b2)

    out = out[:, :ho * wo_k, :].reshape(n, ho, wo_k, coutp)[:, :, :wo, :cout]
    # TODO(synk): NHWC consumers could skip this final transpose HBM pass.
    return jnp.transpose(out, (0, 3, 1, 2))


# ----------------------------------------------------------------------------
# Avg-pool kernel: 2x2 / stride-2 average pool, many rows per grid step.
# ----------------------------------------------------------------------------
def _avg_pool_kernel(x_ref, p_ref, o_ref):
    """x_ref: (TR, 4*Wo)  one row per (plane, output-row):
                           [input row 2i (2*Wo vals) | input row 2i+1 (2*Wo vals)]
    p_ref: (2*Wo, Wo)     0.25 at the two column taps of each window
    o_ref: (TR, Wo)
    """
    two_wo = p_ref.shape[0]
    top = x_ref[:, :two_wo].astype(jnp.float32)
    bot = x_ref[:, two_wo:].astype(jnp.float32)
    o_ref[...] = jnp.dot(top + bot, p_ref[...],
                         preferred_element_type=jnp.float32).astype(o_ref.dtype)


def _plan_pool_rows(n_rows, wo, itemsize, budget):
    sub = _sublane_tile(itemsize)

    def footprint(tr):
        x_blk = tr * 4 * wo * itemsize
        o_blk = tr * wo * itemsize
        p_blk = 2 * wo * wo * 4
        tmp = 3 * tr * 2 * wo * 4
        return 2 * (x_blk + o_blk + p_blk) + tmp

    tr = min(n_rows, 4096)
    if tr > sub:
        tr = (tr // sub) * sub
    while tr > sub and footprint(tr) > budget:
        tr = max(sub, ((tr // 2) // sub) * sub)
    return max(1, tr)


def avg_pool_downsample_2d(x_nchw):
    n, c, h, w = x_nchw.shape
    ho, wo = h // 2, w // 2
    dtype = x_nchw.dtype
    itemsize = int(jnp.dtype(dtype).itemsize)

    x = x_nchw
    if h != 2 * ho or w != 2 * wo:
        x = x[:, :, :2 * ho, :2 * wo]          # VALID pooling: drop odd edges
    rows = n * c * ho
    xr = x.reshape(rows, 4 * wo)               # free row-major reshape

    # column-pair fold: pmat[v, j] = 0.25 iff v // 2 == j
    pmat = 0.25 * (jnp.arange(2 * wo)[:, None] // 2 ==
                   jnp.arange(wo)[None, :]).astype(jnp.float32)

    budget = _vmem_budget_bytes()
    tr = _plan_pool_rows(rows, wo, itemsize, budget)

    out = pl.pallas_call(
        _avg_pool_kernel,
        out_shape=jax.ShapeDtypeStruct((rows, wo), dtype),
        grid=(pl.cdiv(rows, tr),),
        in_specs=[
            pl.BlockSpec((tr, 4 * wo), lambda i: (i, 0)),
            pl.BlockSpec((2 * wo, wo), lambda i: (0, 0)),
        ],
        out_specs=pl.BlockSpec((tr, wo), lambda i: (i, 0)),
        compiler_params=pltpu.CompilerParams(
            dimension_semantics=("parallel",),
            vmem_limit_bytes=budget),
    )(xr, pmat)
    # TODO(synk): for Wo < 128 the stores are masked partials; folding several
    # output rows into the lane dim would make them lane-dense.
    return out.reshape(n, c, ho, wo)


# ----------------------------------------------------------------------------
# Module
# ----------------------------------------------------------------------------
class ResDownsample:
    """JAX/Pallas port of cflearn ResDownsample (signal_dim=2 only)."""

    def __init__(self, in_channels, use_conv, *, signal_dim=2,
                 out_channels=None, padding=1, key=None):
        if signal_dim != 2:
            # TODO(synk): conv_nd / avg_pool_nd for signal_dim in (1, 3) not implemented.
            raise NotImplementedError("only signal_dim=2 is implemented")
        out_channels = out_channels or in_channels
        self.use_conv = use_conv
        self.padding = padding
        if not use_conv:
            if in_channels != out_channels:
                raise ValueError("`in_channels` should be equal to `out_channels` "
                                 "when `use_conv` is set to False")
            self.weight = None
            self.bias = None
        else:
            # Deterministic init mimicking torch Conv2d default (+/- 1/sqrt(fan_in))
            key = key if key is not None else jax.random.PRNGKey(0)
            kw_key, kb_key = jax.random.split(key)
            fan_in = in_channels * 9
            bound = 1.0 / math.sqrt(fan_in)
            self.weight = jax.random.uniform(
                kw_key, (out_channels, in_channels, 3, 3),
                minval=-bound, maxval=bound, dtype=jnp.float32)
            self.bias = jax.random.uniform(
                kb_key, (out_channels,), minval=-bound, maxval=bound,
                dtype=jnp.float32)

    def __call__(self, net):
        if self.use_conv:
            return conv_downsample_2d(net, self.weight, self.bias, self.padding)
        return avg_pool_downsample_2d(net)


# ----------------------------------------------------------------------------
# Demo / check
# ----------------------------------------------------------------------------
if __name__ == "__main__":
    key = jax.random.PRNGKey(0)
    kx, kparams = jax.random.split(key)
    x = jax.random.normal(kx, (2, 4, 16, 16), dtype=jnp.float32)   # NCHW

    # --- conv path (use_conv=True, out_channels=8) ---
    mod_conv = ResDownsample(4, True, out_channels=8, padding=1, key=kparams)
    out_conv = jax.block_until_ready(mod_conv(x))
    ref_conv = lax.conv_general_dilated(
        x, mod_conv.weight, window_strides=(2, 2), padding=((1, 1), (1, 1)),
        dimension_numbers=("NCHW", "OIHW", "NCHW"),
    ) + mod_conv.bias.reshape(1, -1, 1, 1)
    assert out_conv.shape == (2, 8, 8, 8), out_conv.shape
    assert np.allclose(np.asarray(out_conv), np.asarray(ref_conv),
                       rtol=1e-4, atol=1e-4)

    # --- avg-pool path (use_conv=False) ---
    mod_pool = ResDownsample(4, False)
    out_pool = jax.block_until_ready(mod_pool(x))
    ref_pool = lax.reduce_window(x, 0.0, lax.add, (1, 1, 2, 2), (1, 1, 2, 2),
                                 "VALID") / 4.0
    assert out_pool.shape == (2, 4, 8, 8), out_pool.shape
    assert np.allclose(np.asarray(out_pool), np.asarray(ref_pool),
                       rtol=1e-4, atol=1e-4)

    print("KERNEL_OK")
</pallas_src>

<mosaic_0001>
module attributes {stable_mosaic.version = 11 : i64} {
  func.func @_conv_tap_kernel(%arg0: i32, %arg1: i32, %arg2: i32, %arg3: memref<1x8x18x8xf32, #tpu.memory_space<vmem>>, %arg4: memref<1x1x18x8xf32, #tpu.memory_space<vmem>>, %arg5: memref<6x8x128xf32, #tpu.memory_space<vmem>>, %arg6: memref<1x128xf32, #tpu.memory_space<vmem>>, %arg7: memref<1x64x128xf32, #tpu.memory_space<vmem>>) attributes {dimension_semantics = [#tpu.dimension_semantics<parallel>, #tpu.dimension_semantics<parallel>, #tpu.dimension_semantics<parallel>], iteration_bounds = array<i64: 2, 1, 1>, scalar_prefetch = 0 : i64, scratch_operands = 0 : i64, tpu.core_type = #tpu.core_type<tc>, window_params = [{transform_indices = @transform_0, window_bounds = array<i64: 1, 8, 18, 8>}, {transform_indices = @transform_1, window_bounds = array<i64: 1, 1, 18, 8>}, {transform_indices = @transform_2, window_bounds = array<i64: 6, 8, 128>}, {transform_indices = @transform_3, window_bounds = array<i64: 1, 128>}, {transform_indices = @transform_4, window_bounds = array<i64: 1, 64, 128>}]} {
    %c0 = arith.constant 0 : index
    %c0_0 = arith.constant 0 : index
    %0 = vector.load %arg6[%c0, %c0_0] : memref<1x128xf32, #tpu.memory_space<vmem>>, vector<1x128xf32>
    %1 = vector.shape_cast %0 : vector<1x128xf32> to vector<128xf32>
    %c0_1 = arith.constant 0 : index
    %c0_2 = arith.constant 0 : index
    %c0_3 = arith.constant 0 : index
    %c0_4 = arith.constant 0 : index
    %2 = vector.load %arg4[%c0_1, %c0_2, %c0_3, %c0_4] : memref<1x1x18x8xf32, #tpu.memory_space<vmem>>, vector<1x1x18x8xf32>
    %3 = vector.shape_cast %2 : vector<1x1x18x8xf32> to vector<18x8xf32>
    %c0_5 = arith.constant 0 : index
    %c0_6 = arith.constant 0 : index
    %c0_7 = arith.constant 0 : index
    %4 = vector.load %arg5[%c0_5, %c0_6, %c0_7] : memref<6x8x128xf32, #tpu.memory_space<vmem>>, vector<1x8x128xf32>
    %5 = vector.shape_cast %4 : vector<1x8x128xf32> to vector<8x128xf32>
    %c1 = arith.constant 1 : index
    %c0_8 = arith.constant 0 : index
    %c0_9 = arith.constant 0 : index
    %6 = vector.load %arg5[%c1, %c0_8, %c0_9] : memref<6x8x128xf32, #tpu.memory_space<vmem>>, vector<1x8x128xf32>
    %7 = vector.shape_cast %6 : vector<1x8x128xf32> to vector<8x128xf32>
    %c2 = arith.constant 2 : index
    %c0_10 = arith.constant 0 : index
    %c0_11 = arith.constant 0 : index
    %8 = vector.load %arg5[%c2, %c0_10, %c0_11] : memref<6x8x128xf32, #tpu.memory_space<vmem>>, vector<1x8x128xf32>
    %9 = vector.shape_cast %8 : vector<1x8x128xf32> to vector<8x128xf32>
    %c3 = arith.constant 3 : index
    %c0_12 = arith.constant 0 : index
    %c0_13 = arith.constant 0 : index
    %10 = vector.load %arg5[%c3, %c0_12, %c0_13] : memref<6x8x128xf32, #tpu.memory_space<vmem>>, vector<1x8x128xf32>
    %11 = vector.shape_cast %10 : vector<1x8x128xf32> to vector<8x128xf32>
    %c4 = arith.constant 4 : index
    %c0_14 = arith.constant 0 : index
    %c0_15 = arith.constant 0 : index
    %12 = vector.load %arg5[%c4, %c0_14, %c0_15] : memref<6x8x128xf32, #tpu.memory_space<vmem>>, vector<1x8x128xf32>
    %13 = vector.shape_cast %12 : vector<1x8x128xf32> to vector<8x128xf32>
    %c5 = arith.constant 5 : index
    %c0_16 = arith.constant 0 : index
    %c0_17 = arith.constant 0 : index
    %14 = vector.load %arg5[%c5, %c0_16, %c0_17] : memref<6x8x128xf32, #tpu.memory_space<vmem>>, vector<1x8x128xf32>
    %15 = vector.shape_cast %14 : vector<1x8x128xf32> to vector<8x128xf32>
    %c0_i32 = arith.constant 0 : i32
    %c8_i32 = arith.constant 8 : i32
    %16 = arith.addi %c0_i32, %c8_i32 : i32
    %c1_i32 = arith.constant 1 : i32
    scf.for %arg8 = %c0_i32 to %16 step %c1_i32  : i32 {
      %c0_19 = arith.constant 0 : index
      %17 = arith.index_cast %arg8 : i32 to index
      %c0_20 = arith.constant 0 : index
      %c0_21 = arith.constant 0 : index
      %18 = vector.load %arg3[%c0_19, %17, %c0_20, %c0_21] : memref<1x8x18x8xf32, #tpu.memory_space<vmem>>, vector<1x1x18x8xf32>
      %19 = vector.shape_cast %18 : vector<1x1x18x8xf32> to vector<18x8xf32>
      %c1_i32_22 = arith.constant 1 : i32
      %20 = arith.addi %arg8, %c1_i32_22 : i32
      %c7_i32 = arith.constant 7 : i32
      %21 = arith.minsi %20, %c7_i32 : i32
      %c1_i32_23 = arith.constant 1 : i32
      %22 = arith.addi %arg8, %c1_i32_23 : i32
      %c8_i32_24 = arith.constant 8 : i32
      %23 = arith.cmpi slt, %22, %c8_i32_24 : i32
      %c0_25 = arith.constant 0 : index
      %24 = arith.index_cast %21 : i32 to index
      %c0_26 = arith.constant 0 : index
      %c0_27 = arith.constant 0 : index
      %25 = vector.load %arg3[%c0_25, %24, %c0_26, %c0_27] : memref<1x8x18x8xf32, #tpu.memory_space<vmem>>, vector<1x1x18x8xf32>
      %26 = vector.shape_cast %25 : vector<1x1x18x8xf32> to vector<18x8xf32>
      %27 = arith.select %23, %26, %3 : vector<18x8xf32>
      %cst = arith.constant 0.000000e+00 : f32
      %28 = vector.broadcast %cst : f32 to vector<8x128xf32>
      %29 = vector.extract_strided_slice %19 {offsets = [0, 0], sizes = [8, 8], strides = [1, 1]} : vector<18x8xf32> to vector<8x8xf32>
      %cst_28 = arith.constant dense<0.000000e+00> : vector<8x128xf32>
      %30 = tpu.matmul %29, %5, %cst_28 {dimension_numbers = #tpu.dot_dimension_numbers<[1], [0], [0], [1], [0, 0, 1, 1], [], []>} : vector<8x8xf32>, vector<8x128xf32>, vector<8x128xf32> -> vector<8x128xf32>
      %31 = arith.addf %28, %30 : vector<8x128xf32>
      %32 = vector.extract_strided_slice %19 {offsets = [1, 0], sizes = [8, 8], strides = [1, 1]} : vector<18x8xf32> to vector<8x8xf32>
      %cst_29 = arith.constant dense<0.000000e+00> : vector<8x128xf32>
      %33 = tpu.matmul %32, %7, %cst_29 {dimension_numbers = #tpu.dot_dimension_numbers<[1], [0], [0], [1], [0, 0, 1, 1], [], []>} : vector<8x8xf32>, vector<8x128xf32>, vector<8x128xf32> -> vector<8x128xf32>
      %34 = arith.addf %31, %33 : vector<8x128xf32>
      %35 = vector.extract_strided_slice %19 {offsets = [9, 0], sizes = [8, 8], strides = [1, 1]} : vector<18x8xf32> to vector<8x8xf32>
      %cst_30 = arith.constant dense<0.000000e+00> : vector<8x128xf32>
      %36 = tpu.matmul %35, %9, %cst_30 {dimension_numbers = #tpu.dot_dimension_numbers<[1], [0], [0], [1], [0, 0, 1, 1], [], []>} : vector<8x8xf32>, vector<8x128xf32>, vector<8x128xf32> -> vector<8x128xf32>
      %37 = arith.addf %34, %36 : vector<8x128xf32>
      %38 = vector.extract_strided_slice %19 {offsets = [10, 0], sizes = [8, 8], strides = [1, 1]} : vector<18x8xf32> to vector<8x8xf32>
      %cst_31 = arith.constant dense<0.000000e+00> : vector<8x128xf32>
      %39 = tpu.matmul %38, %11, %cst_31 {dimension_numbers = #tpu.dot_dimension_numbers<[1], [0], [0], [1], [0, 0, 1, 1], [], []>} : vector<8x8xf32>, vector<8x128xf32>, vector<8x128xf32> -> vector<8x128xf32>
      %40 = arith.addf %37, %39 : vector<8x128xf32>
      %41 = vector.extract_strided_slice %27 {offsets = [0, 0], sizes = [8, 8], strides = [1, 1]} : vector<18x8xf32> to vector<8x8xf32>
      %cst_32 = arith.constant dense<0.000000e+00> : vector<8x128xf32>
      %42 = tpu.matmul %41, %13, %cst_32 {dimension_numbers = #tpu.dot_dimension_numbers<[1], [0], [0], [1], [0, 0, 1, 1], [], []>} : vector<8x8xf32>, vector<8x128xf32>, vector<8x128xf32> -> vector<8x128xf32>
      %43 = arith.addf %40, %42 : vector<8x128xf32>
      %44 = vector.extract_strided_slice %27 {offsets = [1, 0], sizes = [8, 8], strides = [1, 1]} : vector<18x8xf32> to vector<8x8xf32>
      %cst_33 = arith.constant dense<0.000000e+00> : vector<8x128xf32>
      %45 = tpu.matmul %44, %15, %cst_33 {dimension_numbers = #tpu.dot_dimension_numbers<[1], [0], [0], [1], [0, 0, 1, 1], [], []>} : vector<8x8xf32>, vector<8x128xf32>, vector<8x128xf32> -> vector<8x128xf32>
      %46 = arith.addf %43, %45 : vector<8x128xf32>
      %c8_i32_34 = arith.constant 8 : i32
      %47 = arith.muli %arg8, %c8_i32_34 : i32
      %48 = tpu.assume_multiple %47, 8 : i32
      %49 = vector.shape_cast %1 : vector<128xf32> to vector<1x128xf32>
      %50 = vector.broadcast %49 : vector<1x128xf32> to vector<8x128xf32>
      %51 = arith.addf %46, %50 : vector<8x128xf32>
      %c0_35 = arith.constant 0 : index
      %52 = arith.index_cast %48 : i32 to index
      %c0_36 = arith.constant 0 : index
      %53 = vector.load %arg7[%c0_35, %52, %c0_36] : memref<1x64x128xf32, #tpu.memory_space<vmem>>, vector<1x8x128xf32>
      %54 = vector.shape_cast %53 : vector<1x8x128xf32> to vector<8x128xf32>
      %55 = vector.shape_cast %51 : vector<8x128xf32> to vector<1x8x128xf32>
      tpu.vector_store %arg7[%c0_35, %52, %c0_36], %55 {strides = array<i32>} : memref<1x64x128xf32, #tpu.memory_space<vmem>>, vector<1x8x128xf32>,
    }
    %c8_i32_18 = arith.constant 8 : i32
    return
  }
  func.func @transform_0(%arg0: i32, %arg1: i32, %arg2: i32) -> (i32, i32, i32, i32) {
    %c0_i32 = arith.constant 0 : i32
    %c0_i32_0 = arith.constant 0 : i32
    %c0_i32_1 = arith.constant 0 : i32
    return %arg0, %arg1, %c0_i32, %c0_i32_0 : i32, i32, i32, i32
  }
  func.func @transform_1(%arg0: i32, %arg1: i32, %arg2: i32) -> (i32, i32, i32, i32) {
    %c1_i32 = arith.constant 1 : i32
    %0 = arith.addi %arg1, %c1_i32 : i32
    %c8_i32 = arith.constant 8 : i32
    %1 = arith.muli %0, %c8_i32 : i32
    %c0_i32 = arith.constant 0 : i32
    %c0_i32_0 = arith.constant 0 : i32
    %c0_i32_1 = arith.constant 0 : i32
    return %arg0, %1, %c0_i32, %c0_i32_0 : i32, i32, i32, i32
  }
  func.func @transform_2(%arg0: i32, %arg1: i32, %arg2: i32) -> (i32, i32, i32) {
    %c0_i32 = arith.constant 0 : i32
    %c0_i32_0 = arith.constant 0 : i32
    %c0_i32_1 = arith.constant 0 : i32
    return %c0_i32, %c0_i32_0, %arg2 : i32, i32, i32
  }
  func.func @transform_3(%arg0: i32, %arg1: i32, %arg2: i32) -> (i32, i32) {
    %c0_i32 = arith.constant 0 : i32
    %c0_i32_0 = arith.constant 0 : i32
    return %c0_i32, %arg2 : i32, i32
  }
  func.func @transform_4(%arg0: i32, %arg1: i32, %arg2: i32) -> (i32, i32, i32) {
    %c0_i32 = arith.constant 0 : i32
    return %arg0, %arg1, %arg2 : i32, i32, i32
  }
}

</mosaic_0001>

<bundles_post_ra>
// kernel: tpu_custom_call.1
= control target key start
LH: loop header
LB: loop body
LE: loop exit
PB: predicated region body
PF: predicated region fallthrough
CT: control target
= control target key end

     0   :  { %9 = vsyncpa [#allocation3], 0  ;;  %s1482_s0 = inlined_call_operand.vmem [shape: f32[2,9,18,8], index: 0, kind: input, shape index: {}]   ;;  %s1483_s1 = inlined_call_operand.vmem [shape: f32[2,9,18,8], index: 1, kind: input, shape index: {}]   ;;  %s1484_s2 = inlined_call_operand.vmem [shape: f32[6,8,128], index: 2, kind: input, shape index: {}]   ;;  %s1485_s3 = inlined_call_operand.vmem [shape: f32[1,128], index: 3, kind: input, shape index: {}]   ;;  %s1486_s4 = inlined_call_operand.hbm [shape: f32[2,64,128], index: 4, kind: output, shape index: {}]  }
   0x1   :  { %11 = vsyncpa [#allocation3 + $0x1], 0  ;;  %s1267_s15 = smov 0   ;;  %s1269_s16 = smov 0  }
   0x2   :  { %s1271_s17 = smov 0   ;;  %s1273_s18 = smov 0  }
   0x3   :  { %s1275_s19 = smov 0   ;;  %s1277_s20 = smov 0  }
   0x4 LB: > { %s1008_s21 = sadd.s32 4294967295, %s1231_s20   ;;  %s1009_s22 = sadd.s32 4294967294, %s1231_s20   ;;  %s1231_s20 = sphi %s1277_s20, %s17_s20   ;;  %s1227_s19 = sphi %s1275_s19, %s1494_s19   ;;  %s1223_s18 = sphi %s1273_s18, %s1493_s18   ;;  %s1219_s17 = sphi %s1271_s17, %s1492_s17   ;;  %s1215_s16 = sphi %s1269_s16, %s1491_s16   ;;  %s1211_s15 = sphi %s1267_s15, %s1490_s15  }
   0x5   : > { %s36_s23 = sadd.s32 1, %s1227_s19  ;;  %s159_s24 = sadd.s32 1, %s1219_s17 }
   0x6   : > { %p38_p0 = scmp.ge.s32.totalorder %s36_s23, 2  ;;  %p169_p1 = scmp.ne.s32.totalorder %s1219_s17, %s1215_s16 }
   0x7   : > { %p170_p2 = scmp.eq.s32.totalorder %s1008_s21, 1  ;;  %p175_p3 = scmp.ne.s32.totalorder %s1215_s16, %s1211_s15 }
   0x8   : > { %s1496_s23 = smov (%p38_p0, %s36_s23), 0  ;;  %p176_p5 = scmp.eq.s32.totalorder %s1009_s22, 1 }
   0x9   : > { %p1307_p4 = por %p170_p2, %p169_p1  ;;  %s152_s26 = ssub.s32 %s1227_s19, %s1496_s23 }
   0xa   : > { %p1014_p6 = scmp.ge.s32.totalorder %s1231_s20, 1  ;;  %p157_p7 = scmp.eq.s32.totalorder %s152_s26, 0 }
   0xb   : > { %p1314_p8 = por %p176_p5, %p175_p3  ;;  %p247_p9 = scmp.lt.s32.totalorder %s1231_s20, 3 }
   0xc   : > { %s1320_s28 = scalar_select %p157_p7, %s1219_s17, %s159_s24  }
   0xd   : > { %p248_p10 = pnand %p1014_p6, %p247_p9 }
   0xe   : > { %s298_s29 = sand.u32 (!%p248_p10), 1, %s1215_s16   ;;  %p307_p11 = scmp.lt.s32.totalorder (!%p248_p10), %s1223_s18, 1 }
   0xf   : > { %251 = sbr.rel (%p248_p10) target bundleno = 255 (0xff), region = 36  ;;  %s1341_s10 = sshll.u32 (!%p248_p10), %s298_s29, 6 }
  0x10   : > { %s300_s14 = scalar_lea.vmem (!%p248_p10), [#allocation2], %s1341_s10  ;;  %s1377_s21 = smov (!%p248_p10), 0  }
  0x14   : > { %v1327_v0 = vld [vmem:[%s1485_s3] ss:$0 sm:$0xff]  ;;  %v1337_v2 = vld [vmem:[%s1484_s2 + $0x8] sm:$0xff]  ;;  %v1346_v3 = vld [vmem:[%s1484_s2 + $0x10] sm:$0xff]  ;;  %s308_s30 = scalar_select %p307_p11, %s1223_s18, 1 }
  0x15   : > { %v1332_v1 = vld [vmem:[%s1484_s2] sm:$0xff]  ;;  %v1351_v4 = vld [vmem:[%s1484_s2 + $0x18] sm:$0xff]  ;;  %v1361_v6 = vld [vmem:[%s1484_s2 + $0x28] sm:$0xff] }
  0x16   : > { %v1356_v5 = vld [vmem:[%s1484_s2 + $0x20] sm:$0xff]  ;;  %s1081_s5 = smul.u32 216, %s308_s30 }
  0x18   : > { %s1367_s8 = scalar_lea.vmem %s1482_s0, %s1081_s5  ;;  %s1037_s9 = sadd.s32 192, %s1081_s5 }
  0x19   : > { %s332_s13 = scalar_lea.vmem %s1483_s1, %s1037_s9 }
  0x1a   : > { %v1372_v7 = vld [vmem:[%s332_s13] sm:$0xff]  ;;  %v1374_v8 = vld [vmem:[%s332_s13 + $0x8] sm:$0xff] }
  0x1b LB: >> { %v1237_v9 = vmov 0.0   ;;  %vm1238_vm0 = vmmov 0   ;;  %s363_s22 = smul.u32 24, %s1235_s21  ;;  %s1386_s24 = sadd.s32 1, %s1235_s21   ;;  %vm387_vm1 = vcmask 64512   ;;  %vm383_vm2 = vcmask 1046528   ;;  %s1235_s21 = sphi %s1377_s21, %s1489_s21  }
  0x1c   : >> { %1051 = vmatprep.subr.mxu0 %v1237_v9  ;;  %1056 = vmatprep.subr.mxu1 %v1237_v9  ;;  %p369_p12 = scmp.lt.s32.totalorder %s1386_s24, 7  ;;  %p371_p13 = scmp.lt.s32.totalorder %s1386_s24, 8  ;;  %vm608_vm3 = vcmask 1045504  }
  0x1d   : >> { %1052 = vmatpush3.msra.mxu0 %v1337_v2  ;;  %1053 = vmatprep.mubr.msk.f32.mxu0 %vm1238_vm0, %v1237_v9  ;;  %s364_s26 = scalar_lea.vmem %s1367_s8, %s363_s22  ;;  %s1029_s9 = sshll.u32 %s1235_s21, 3 }
  0x1e   : >> { %1057 = vmatpush3.msra.mxu1 %v1332_v1  ;;  %1058 = vmatprep.mubr.msk.f32.mxu1 %vm1238_vm0, %v1237_v9  ;;  %v365_v10 = vld [vmem:[%s364_s26] sm:$0xff]  ;;  %v366_v11 = vld [vmem:[%s364_s26 + $0x8] sm:$0xff]  ;;  %v367_v12 = vld [vmem:[%s364_s26 + $0x10] sm:$0x3]  ;;  %s370_s30 = scalar_select %p369_p12, %s1386_s24, 7 }
  0x1f   : >> { %1061 = vmatprep.subr.mxu0 %v1237_v9  ;;  %1066 = vmatprep.subr.mxu1 %v1237_v9  ;;  %v384_v13 = vrot.slane %v365_v10, 1  ;;  %v385_v14 = vrot.slane %v366_v11, 1  ;;  %v609_v15 = vrot.slane %v366_v11, 2  ;;  %v533_v16 = vrot.slane %v367_v12, 1  ;;  %s376_s5 = scalar_select %p371_p13, 1, 0 }
  0x20   : >> { %1059 = vmatmul.mubr.msk.f32.vlgmr.msra.gmra.mxu1 %vm387_vm1, %v365_v10  ;;  %v610_v17 = vrot.slane %v367_v12, 2  ;;  %s372_s6 = smul.u32 24, %s370_s30  ;;  %s844_s11 = scalar_lea.vmem %s300_s14, %s1029_s9 [#allocation2] }
  0x21   : >> { %1067 = vmatpush3.msra.mxu1 %v1351_v4  ;;  %1068 = vmatprep.mubr.msk.f32.mxu1 %vm1238_vm0, %v1237_v9  ;;  %v386_v18 = vsel %vm383_vm2, %v384_v13, %v385_v14  ;;  %v377_v19 = vstv %s376_s5  ;;  %v534_v21 = vsel %vm383_vm2, %v385_v14, %v533_v16  ;;  %p359_p0 = scmp.ge.s32.totalorder %s1386_s24, 8   ;;  %s1489_s21 = smov %s1386_s24 }
  0x22   : >> { %1076 = vmatprep.subr.mxu1 %v1237_v9  ;;  %1054 = vmatmul.mubr.msk.f32.vlgmr.msra.gmra.mxu0 %vm387_vm1, %v386_v18  ;;  %v611_v20 = vsel %vm608_vm3, %v609_v15, %v610_v17  ;;  %s373_s7 = scalar_lea.vmem %s1367_s8, %s372_s6  ;;  %vm378_vm4 = vcmp.eq.s32.totalorder %v377_v19, 1  ;;  %s1038_s12 = sshll.u32 (%p359_p0), %s1223_s18, 10 }
  0x23   : >> { %1062 = vmatpush3.msra.mxu0 %v1346_v3  ;;  %1063 = vmatprep.mubr.msk.f32.mxu0 %vm1238_vm0, %v1237_v9  ;;  %v374_v22 = vld [vmem:[%s373_s7] sm:$0xff]  ;;  %v375_v23 = vld [vmem:[%s373_s7 + $0x8] sm:$0xff]  ;;  %s1429_s22 = scalar_lea.hbm (%p359_p0), %s1486_s4, %s1038_s12  ;;  %s863_s26 = sshll.u32 (%p359_p0), %s300_s14, 4  ;;  %s1433_s26 = int_to_ptr.vmem [resolvable:$true] %s863_s26 }
  0x24   : >> { %1071 = vmatprep.subr.mxu0 %v1237_v9  ;;  %1069 = vmatmul.mubr.msk.f32.vlgmr.msra.gmra.mxu1 %vm387_vm1, %v611_v20  ;;  %v379_v24 = vsel %vm378_vm4, %v374_v22, %v1372_v7  ;;  %v380_v25 = vsel %vm378_vm4, %v375_v23, %v1374_v8  ;;  %s1437_s24 = scalar_lea.sflag (%p359_p0), [#allocation3], %s298_s29  ;;  %s1151_s8 = scalar_lea.vmem (%p359_p0), %s1433_s26, 1024 }
  0x25   : >> { %1077 = vmatpush3.msra.mxu1 %v1361_v6  ;;  %1078 = vmatprep.mubr.msk.f32.mxu1 %vm1238_vm0, %v1237_v9  ;;  %v760_v26 = vrot.slane %v379_v24, 1  ;;  %v761_v27 = vrot.slane %v380_v25, 1  ;;  %p1152_p1 = scmp.ne.s32.totalorder (%p359_p0), %s1433_s26, %s1151_s8  ;;  %s1239_s18 = smov (%p359_p0), [#allocation2]  }
  0x26   : >> { %1064 = vmatmul.mubr.msk.f32.vlgmr.msra.gmra.mxu0 %vm387_vm1, %v534_v21  ;;  %s1155_s30 = sshll.u32 (%p359_p0), %s1239_s18, 4  ;;  %s1156_s30 = int_to_ptr.vmem [resolvable:$false] %s1155_s30 }
  0x27   : >> { %1072 = vmatpush3.msra.mxu0 %v1356_v5  ;;  %1073 = vmatprep.mubr.msk.f32.mxu0 %vm1238_vm0, %v1237_v9  ;;  %v762_v28 = vsel %vm383_vm2, %v760_v26, %v761_v27  ;;  %p1153_p2 = pnand (%p359_p0), %p1152_p1, %p1307_p4  ;;  %s1157_s5 = scalar_lea.vmem (%p359_p0), %s1156_s30, 2048 }
  0x28   : >> { %1079 = vmatmul.mubr.msk.f32.vlgmr.msra.gmra.mxu1 %vm387_vm1, %v762_v28  ;;  %p1158_p5 = scmp.lt.s32.totalorder (%p359_p0), %s1433_s26, %s1156_s30  ;;  %p1159_p6 = scmp.lt.s32.totalorder (%p359_p0), %s1157_s5, %s1151_s8 }
  0x29   : > { %p1154_p3 = pneg (%p359_p0), %p1153_p2 }
  0x2a   : >> { %1074 = vmatmul.mubr.msk.f32.vlgmr.msra.gmra.mxu0 %vm387_vm1, %v379_v24  ;;  %p1160_p7 = por (%p359_p0), %p1159_p6, %p1158_p5 }
  0x2c   : > { %p1161_p9 = pnand (%p359_p0), %p1160_p7, %p1154_p3 }
  0xe0   : >> { %v528_v29 = vpop.f32.mrf.mxu1 }
  0xe2   : >> { %v1060_v30 = vpop.f32.mrf.mxu1  ;;  %v456_v31 = vpop.f32.mrf.mxu0 }
  0xe3   : >> { %v529_v34 = vadd.f32 %v528_v29, %v456_v31 }
  0xe4   : >> { %v1055_v32 = vpop.f32.mrf.mxu0  ;;  %v680_v33 = vpop.f32.mrf.mxu1 }
  0xe6   : >> { %v603_v35 = vpop.f32.mrf.mxu0  ;;  %v1070_v36 = vpop.f32.mrf.mxu1 }
  0xe7   : >> { %v607_v37 = vadd.f32 %v603_v35, %v529_v34 }
  0xe8   : >> { %v1065_v38 = vpop.f32.mrf.mxu0  ;;  %v831_v39 = vpop.f32.mrf.mxu1 }
  0xe9   : >> { %v684_v40 = vadd.f32 %v680_v33, %v607_v37 }
  0xea   : >> { %v754_v41 = vpop.f32.mrf.mxu0  ;;  %v1080_v42 = vpop.f32.mrf.mxu1 }
  0xeb   : >> { %v758_v43 = vadd.f32 %v754_v41, %v684_v40 }
  0xec   : >> { %v1075_v44 = vpop.f32.mrf.mxu0 }
  0xed   : >> { %v835_v45 = vadd.f32 %v831_v39, %v758_v43  ;;  %361 = sbr.rel (!%p359_p0) target bundleno = 27 (0x1b), region = 95 }
  0xef   : >> { %v843_v46 = vadd.f32 %v1327_v0, %v835_v45 }
  0xf1   : >> { %845 = vst [vmem:[%s844_s11] sm:$0xff] %v843_v46 }
  0xf2   : > { %1164 = shalt.err (!%p1161_p9)
}
  0xf3   : > { %s1165_s29 = scalar_lea.hbm %s1429_s22, 1024  ;;  %s1169_s6 = scalar_lea.hbm %s1486_s4, 2048 }
  0xf4   : > { %p1166_p10 = scmp.ne.s32.totalorder %s1429_s22, %s1165_s29  ;;  %p1170_p13 = scmp.lt.s32.totalorder %s1429_s22, %s1486_s4 }
  0xf5   : > { %p1171_p0 = scmp.lt.s32.totalorder %s1169_s6, %s1165_s29 }
  0xf6   : > { %p1167_p11 = pnand %p1166_p10, %p1307_p4 }
  0xf7   : > { %p1172_p1 = por %p1171_p0, %p1170_p13 }
  0xf8   : > { %p1168_p12 = pneg %p1167_p11 }
  0xfa   : > { %p1173_p2 = pnand %p1172_p1, %p1168_p12 }
  0xfc   : > { %1176 = shalt.err (!%p1173_p2)
}
  0xfd   : > { %s1240_s11 = smov 128   ;;  %s1241_s12 = smov 8  }
  0xfe   : > { %1083 = dma.vmem_to_hbm [thread:$0]  (%p1307_p4), %s1433_s26, 1024, %s1429_s22, %s1437_s24, %s1240_s11, %s1240_s11, %s1241_s12  }
  0xff PF: > { %p1090_p3 = scmp.ge.s32.totalorder %s1231_s20, 2  ;;  %s878_s13 = sand.u32 1, %s1211_s15  }
 0x100   : > { %s879_s21 = scalar_lea.sflag [#allocation3], %s878_s13 }
 0x101   : > { %p1086_p5 = pnand %p1090_p3, %p1314_p8 }
 0x103   : > { %p1087_p6 = pneg %p1086_p5 }
 0x105   : > { %1206 = dma.done.wait (%p1087_p6), %s879_s21, 1024  }
 0x106   : > { %1208 = vsyncadd (%p1087_p6), %s879_s21, 4294966272  ;;  %s17_s20 = sadd.s32 1, %s1231_s20   ;;  %s1490_s15 = smov %s1215_s16 }
 0x107   : > { %p14_p7 = scmp.ge.s32.totalorder %s17_s20, 4   ;;  %s1491_s16 = smov %s1219_s17 }
 0x108   : > { %s1492_s17 = smov %s1320_s28  ;;  %s1493_s18 = smov %s1227_s19 }
 0x109   : > { %s1494_s19 = smov %s1496_s23  ;;  %16 = sbr.rel (!%p14_p7) target bundleno = 4 (0x4), region = 106 }
 0x10e   :  { %884 = vsyncpa [#allocation3], 1 }
 0x10f   :  { %886 = vsyncpa [#allocation3 + $0x1], 1 }

</bundles_post_ra>
